<compile_context>
chip_gen: v6e
topology: v6e:2x2x1
jax: 0.10.0
libtpu: 0.0.40
codegen_flags: <defaults>
</compile_context>

<pallas_src>
import functools

import jax
import jax.numpy as jnp
from jax.experimental import pallas as pl
from jax.experimental.pallas import tpu as pltpu


def _conv3x3_sigmoid_kernel(w_ref, b_ref, x_ref, o_ref, *, img_w):
    """One grid step: full image height x a group of images along the lanes.

    w_ref: (3, 3) f32 SMEM   conv weight (out/in channel dims squeezed)
    b_ref: (1,)   f32 SMEM   conv bias
    x_ref: (H, L) f32 VMEM   input slab; image n occupies lanes [n*W, (n+1)*W)
    o_ref: (H, L) f32 VMEM   output slab
    """
    H, L = o_ref.shape
    W = img_w

    x = x_ref[...]                                    # single full-tile load

    # --- Narrow masks, computed once (no full-tile iota / modulo). ----------
    # Column mask pair, (1, L): lane rolls must not leak across image
    # boundaries (lane = n*W + w) nor wrap around the slab edge.
    ci = jax.lax.broadcasted_iota(jnp.int32, (1, L), 1) % W
    has_left = ci >= 1                                # x[., j-1] is in-image
    has_right = ci <= W - 2                           # x[., j+1] is in-image
    # Row mask pair, (H, 1): the row axis is exactly the image height, so the
    # wrapped first/last row of a sublane roll is Conv2d's zero padding.
    ri = jax.lax.broadcasted_iota(jnp.int32, (H, 1), 0)
    has_up = ri >= 1                                  # x[i-1, .] is in-image
    has_dn = ri <= H - 2                              # x[i+1, .] is in-image

    # --- Row-shifted copies: 2 sublane (XLU) rolls + 2 narrow selects. ------
    x_up = jnp.where(has_up, pltpu.roll(x, shift=1, axis=0), 0.0)       # x[i-1]
    x_dn = jnp.where(has_dn, pltpu.roll(x, shift=H - 1, axis=0), 0.0)   # x[i+1]

    # --- Per-column-offset row sums: 9 VPU FMAs, no shifts. -----------------
    # s_dj[i, j] = sum_di w[di+1, dj+1] * x[i+di, j]
    s_l = w_ref[0, 0] * x_up + w_ref[1, 0] * x + w_ref[2, 0] * x_dn     # dj=-1
    s_c = w_ref[0, 1] * x_up + w_ref[1, 1] * x + w_ref[2, 1] * x_dn     # dj= 0
    s_r = w_ref[0, 2] * x_up + w_ref[1, 2] * x + w_ref[2, 2] * x_dn     # dj=+1

    # --- Column taps: 2 lane (XLU) rolls + 2 narrow selects. ----------------
    # out[i, j] = s_l[i, j-1] + s_c[i, j] + s_r[i, j+1] + bias
    tap_l = jnp.where(has_left, pltpu.roll(s_l, shift=1, axis=1), 0.0)
    tap_r = jnp.where(has_right, pltpu.roll(s_r, shift=L - 1, axis=1), 0.0)

    z = tap_l + s_c + tap_r + b_ref[0]

    # Exact sigmoid: exp runs on the EUP slot, which has plenty of slack here.
    o_ref[...] = 1.0 / (1.0 + jnp.exp(-z))


def _pick_images_per_step(n, h, w, *, target_block_bytes=2 << 20):
    """Images folded into one grid step along the lane axis of the (H, N*W) slab.

    A multi-step tiling needs bn | N and (bn*W) % 128 == 0 (lane-tiling rule for
    partial blocks).  Among valid choices take the largest whose f32 I/O block
    stays under ~target_block_bytes; any such choice leaves >= 2 grid steps
    (v7x megacore sharding + DMA/compute overlap).  If none exists (tiny batch
    or awkward width), fall back to a single step over the whole padded slab.
    """
    img_bytes = 4 * h * w
    cands = [d for d in range(1, n)
             if n % d == 0 and (d * w) % 128 == 0
             and d * img_bytes <= target_block_bytes]
    return max(cands) if cands else n


def model_forward(x_nchw, weight, bias):
    """Conv2d(1,1,3,padding=1) + sigmoid.  x_nchw: (N,1,H,W) f32 -> (N,1,H,W)."""
    N, C, H, W = x_nchw.shape
    assert C == 1, "Model uses Conv2d(1, 1, 3, padding=1)"

    w2d = weight.reshape(3, 3).astype(jnp.float32)
    b1d = bias.reshape(1).astype(jnp.float32)

    # Lane-dense slab: fold the batch into the lane (last) axis.  Wrapper-side
    # layout plumbing; turns masked partial stores into full-lane stores.
    slab = jnp.transpose(x_nchw.reshape(N, H, W).astype(jnp.float32),
                         (1, 0, 2)).reshape(H, N * W)

    bn = _pick_images_per_step(N, H, W)
    if bn < N:
        lanes = N * W                       # multiple of 128 by construction
        block_l = bn * W
    else:
        # Single-step fallback: pad the lane axis to a multiple of 128 so the
        # store path stays unmasked; padded lanes are dropped afterwards and
        # never leak into real outputs (image-boundary taps are masked).
        lanes = ((N * W + 127) // 128) * 128
        block_l = lanes
        if lanes != N * W:
            slab = jnp.pad(slab, ((0, 0), (0, lanes - N * W)))
    grid = (lanes // block_l,)

    block_bytes = 4 * H * block_l
    # ~4 double-buffered I/O blocks + ~6 live tile-sized intermediates + slack.
    vmem_limit = int(min(48 << 20, max(8 << 20, 14 * block_bytes)))

    cost = pl.CostEstimate(
        flops=20 * N * H * W,               # 9 mul + ~11 add per output pixel
        transcendentals=N * H * W,          # one exp per output pixel
        bytes_accessed=8 * H * lanes,       # read slab + write slab (f32)
    )

    kernel = functools.partial(_conv3x3_sigmoid_kernel, img_w=W)

    out_slab = pl.pallas_call(
        kernel,
        out_shape=jax.ShapeDtypeStruct((H, lanes), jnp.float32),
        grid=grid,
        in_specs=[
            pl.BlockSpec(memory_space=pltpu.MemorySpace.SMEM),   # weight (3, 3)
            pl.BlockSpec(memory_space=pltpu.MemorySpace.SMEM),   # bias   (1,)
            pl.BlockSpec((H, block_l), lambda i: (0, i)),        # input slab
        ],
        out_specs=pl.BlockSpec((H, block_l), lambda i: (0, i)),
        compiler_params=pltpu.CompilerParams(
            dimension_semantics=("parallel",),
            vmem_limit_bytes=vmem_limit),
        cost_estimate=cost,
    )(w2d, b1d, slab)

    out = out_slab[:, :N * W].reshape(H, N, W)
    return jnp.transpose(out, (1, 0, 2)).reshape(N, 1, H, W)


if __name__ == "__main__":
    # Parameters exactly as Model.__init__: conv.weight = 1.0, conv.bias = 0.0.
    weight = jnp.ones((1, 1, 3, 3), dtype=jnp.float32)
    bias = jnp.zeros((1,), dtype=jnp.float32)
    # (MySigmoid's param = arange(3) is unused in the forward pass.)

    key = jax.random.PRNGKey(0)
    x = jax.random.normal(key, (2, 1, 16, 16), dtype=jnp.float32)

    y = jax.block_until_ready(jax.jit(model_forward)(x, weight, bias))

    # Plain-JAX reference: 3x3 same-conv (zero pad) + sigmoid.
    N, _, H, W = x.shape
    xp = jnp.pad(x[:, 0], ((0, 0), (1, 1), (1, 1)))
    ref = jnp.zeros((N, H, W), jnp.float32) + bias[0]
    for ki in range(3):
        for kj in range(3):
            ref = ref + weight[0, 0, ki, kj] * xp[:, ki:ki + H, kj:kj + W]
    ref = jax.nn.sigmoid(ref)[:, None]

    assert y.shape == x.shape
    assert bool(jnp.allclose(y, ref, atol=1e-5, rtol=1e-5)), "mismatch vs reference"
    print("KERNEL_OK")
</pallas_src>

<mosaic_0001>
module attributes {stable_mosaic.version = 11 : i64} {
  func.func @_conv3x3_sigmoid_kernel(%arg0: i32, %arg1: memref<3x3xf32, #tpu.memory_space<smem>>, %arg2: memref<1xf32, #tpu.memory_space<smem>>, %arg3: memref<16x128xf32, #tpu.memory_space<vmem>>, %arg4: memref<16x128xf32, #tpu.memory_space<vmem>>) attributes {dimension_semantics = [#tpu.dimension_semantics<parallel>], iteration_bounds = array<i64: 1>, scalar_prefetch = 0 : i64, scratch_operands = 0 : i64, tpu.core_type = #tpu.core_type<tc>, window_params = [{transform_indices = @transform_0, window_bounds = array<i64: 3, 3>}, {transform_indices = @transform_1, window_bounds = array<i64: 1>}, {transform_indices = @transform_2, window_bounds = array<i64: 16, 128>}, {transform_indices = @transform_3, window_bounds = array<i64: 16, 128>}]} {
    %c0 = arith.constant 0 : index
    %c0_0 = arith.constant 0 : index
    %0 = vector.load %arg3[%c0, %c0_0] : memref<16x128xf32, #tpu.memory_space<vmem>>, vector<16x128xf32>
    %1 = tpu.iota {dimensions = array<i32: 1>} : vector<1x128xi32>
    %c16_i32 = arith.constant 16 : i32
    %c0_i32 = arith.constant 0 : i32
    %2 = arith.cmpi eq, %c16_i32, %c0_i32 : i32
    %c1_i32 = arith.constant 1 : i32
    %3 = arith.select %2, %c1_i32, %c16_i32 : i32
    %4 = vector.broadcast %3 : i32 to vector<1x128xi32>
    %5 = arith.remsi %1, %4 : vector<1x128xi32>
    %c0_i32_1 = arith.constant 0 : i32
    %6 = vector.broadcast %c0_i32_1 : i32 to vector<1x128xi32>
    %7 = arith.cmpi ne, %5, %6 : vector<1x128xi32>
    %c0_i32_2 = arith.constant 0 : i32
    %8 = vector.broadcast %c0_i32_2 : i32 to vector<1x128xi32>
    %9 = arith.cmpi slt, %5, %8 : vector<1x128xi32>
    %c0_i32_3 = arith.constant 0 : i32
    %10 = arith.cmpi slt, %3, %c0_i32_3 : i32
    %11 = vector.broadcast %10 : i1 to vector<1x128xi1>
    %12 = vector.broadcast %11 : vector<1x128xi1> to vector<1x128xi1>
    %13 = arith.xori %9, %12 : vector<1x128xi1>
    %14 = arith.andi %13, %7 : vector<1x128xi1>
    %15 = vector.broadcast %3 : i32 to vector<1x128xi32>
    %16 = arith.addi %5, %15 : vector<1x128xi32>
    %17 = arith.select %14, %16, %5 : vector<1x128xi1>, vector<1x128xi32>
    %c1_i32_4 = arith.constant 1 : i32
    %18 = vector.broadcast %c1_i32_4 : i32 to vector<1x128xi32>
    %19 = arith.cmpi sge, %17, %18 : vector<1x128xi32>
    %c14_i32 = arith.constant 14 : i32
    %20 = vector.broadcast %c14_i32 : i32 to vector<1x128xi32>
    %21 = arith.cmpi sle, %17, %20 : vector<1x128xi32>
    %22 = tpu.iota {dimensions = array<i32: 0>} : vector<16x1xi32>
    %c1_i32_5 = arith.constant 1 : i32
    %23 = vector.broadcast %c1_i32_5 : i32 to vector<16x1xi32>
    %24 = arith.cmpi sge, %22, %23 : vector<16x1xi32>
    %c14_i32_6 = arith.constant 14 : i32
    %25 = vector.broadcast %c14_i32_6 : i32 to vector<16x1xi32>
    %26 = arith.cmpi sle, %22, %25 : vector<16x1xi32>
    %c1_i32_7 = arith.constant 1 : i32
    %27 = tpu.dynamic_rotate %0 by %c1_i32_7 dim 0 : vector<16x128xf32>, i32 -> vector<16x128xf32>
    %cst = arith.constant 0.000000e+00 : f32
    %28 = vector.shape_cast %24 : vector<16x1xi1> to vector<16x1xi1>
    %29 = vector.broadcast %28 : vector<16x1xi1> to vector<16x128xi1>
    %30 = vector.broadcast %cst : f32 to vector<16x128xf32>
    %31 = arith.select %29, %27, %30 : vector<16x128xi1>, vector<16x128xf32>
    %c15_i32 = arith.constant 15 : i32
    %32 = tpu.dynamic_rotate %0 by %c15_i32 dim 0 : vector<16x128xf32>, i32 -> vector<16x128xf32>
    %cst_8 = arith.constant 0.000000e+00 : f32
    %33 = vector.shape_cast %26 : vector<16x1xi1> to vector<16x1xi1>
    %34 = vector.broadcast %33 : vector<16x1xi1> to vector<16x128xi1>
    %35 = vector.broadcast %cst_8 : f32 to vector<16x128xf32>
    %36 = arith.select %34, %32, %35 : vector<16x128xi1>, vector<16x128xf32>
    %c0_9 = arith.constant 0 : index
    %c0_10 = arith.constant 0 : index
    %37 = memref.load %arg1[%c0_9, %c0_10] : memref<3x3xf32, #tpu.memory_space<smem>>
    %38 = vector.broadcast %37 : f32 to vector<16x128xf32>
    %39 = arith.mulf %38, %31 : vector<16x128xf32>
    %c1 = arith.constant 1 : index
    %c0_11 = arith.constant 0 : index
    %40 = memref.load %arg1[%c1, %c0_11] : memref<3x3xf32, #tpu.memory_space<smem>>
    %41 = vector.broadcast %40 : f32 to vector<16x128xf32>
    %42 = arith.mulf %41, %0 : vector<16x128xf32>
    %43 = arith.addf %39, %42 : vector<16x128xf32>
    %c2 = arith.constant 2 : index
    %c0_12 = arith.constant 0 : index
    %44 = memref.load %arg1[%c2, %c0_12] : memref<3x3xf32, #tpu.memory_space<smem>>
    %45 = vector.broadcast %44 : f32 to vector<16x128xf32>
    %46 = arith.mulf %45, %36 : vector<16x128xf32>
    %47 = arith.addf %43, %46 : vector<16x128xf32>
    %c0_13 = arith.constant 0 : index
    %c1_14 = arith.constant 1 : index
    %48 = memref.load %arg1[%c0_13, %c1_14] : memref<3x3xf32, #tpu.memory_space<smem>>
    %49 = vector.broadcast %48 : f32 to vector<16x128xf32>
    %50 = arith.mulf %49, %31 : vector<16x128xf32>
    %c1_15 = arith.constant 1 : index
    %c1_16 = arith.constant 1 : index
    %51 = memref.load %arg1[%c1_15, %c1_16] : memref<3x3xf32, #tpu.memory_space<smem>>
    %52 = vector.broadcast %51 : f32 to vector<16x128xf32>
    %53 = arith.mulf %52, %0 : vector<16x128xf32>
    %54 = arith.addf %50, %53 : vector<16x128xf32>
    %c2_17 = arith.constant 2 : index
    %c1_18 = arith.constant 1 : index
    %55 = memref.load %arg1[%c2_17, %c1_18] : memref<3x3xf32, #tpu.memory_space<smem>>
    %56 = vector.broadcast %55 : f32 to vector<16x128xf32>
    %57 = arith.mulf %56, %36 : vector<16x128xf32>
    %58 = arith.addf %54, %57 : vector<16x128xf32>
    %c0_19 = arith.constant 0 : index
    %c2_20 = arith.constant 2 : index
    %59 = memref.load %arg1[%c0_19, %c2_20] : memref<3x3xf32, #tpu.memory_space<smem>>
    %60 = vector.broadcast %59 : f32 to vector<16x128xf32>
    %61 = arith.mulf %60, %31 : vector<16x128xf32>
    %c1_21 = arith.constant 1 : index
    %c2_22 = arith.constant 2 : index
    %62 = memref.load %arg1[%c1_21, %c2_22] : memref<3x3xf32, #tpu.memory_space<smem>>
    %63 = vector.broadcast %62 : f32 to vector<16x128xf32>
    %64 = arith.mulf %63, %0 : vector<16x128xf32>
    %65 = arith.addf %61, %64 : vector<16x128xf32>
    %c2_23 = arith.constant 2 : index
    %c2_24 = arith.constant 2 : index
    %66 = memref.load %arg1[%c2_23, %c2_24] : memref<3x3xf32, #tpu.memory_space<smem>>
    %67 = vector.broadcast %66 : f32 to vector<16x128xf32>
    %68 = arith.mulf %67, %36 : vector<16x128xf32>
    %69 = arith.addf %65, %68 : vector<16x128xf32>
    %c1_i32_25 = arith.constant 1 : i32
    %70 = tpu.dynamic_rotate %47 by %c1_i32_25 dim 1 : vector<16x128xf32>, i32 -> vector<16x128xf32>
    %cst_26 = arith.constant 0.000000e+00 : f32
    %71 = vector.shape_cast %19 : vector<1x128xi1> to vector<1x128xi1>
    %72 = vector.broadcast %71 : vector<1x128xi1> to vector<16x128xi1>
    %73 = vector.broadcast %cst_26 : f32 to vector<16x128xf32>
    %74 = arith.select %72, %70, %73 : vector<16x128xi1>, vector<16x128xf32>
    %c127_i32 = arith.constant 127 : i32
    %75 = tpu.dynamic_rotate %69 by %c127_i32 dim 1 : vector<16x128xf32>, i32 -> vector<16x128xf32>
    %cst_27 = arith.constant 0.000000e+00 : f32
    %76 = vector.shape_cast %21 : vector<1x128xi1> to vector<1x128xi1>
    %77 = vector.broadcast %76 : vector<1x128xi1> to vector<16x128xi1>
    %78 = vector.broadcast %cst_27 : f32 to vector<16x128xf32>
    %79 = arith.select %77, %75, %78 : vector<16x128xi1>, vector<16x128xf32>
    %80 = arith.addf %74, %58 : vector<16x128xf32>
    %81 = arith.addf %80, %79 : vector<16x128xf32>
    %c0_28 = arith.constant 0 : index
    %82 = memref.load %arg2[%c0_28] : memref<1xf32, #tpu.memory_space<smem>>
    %83 = vector.broadcast %82 : f32 to vector<16x128xf32>
    %84 = arith.addf %81, %83 : vector<16x128xf32>
    %cst_29 = arith.constant 0.000000e+00 : f32
    %85 = vector.broadcast %cst_29 : f32 to vector<16x128xf32>
    %86 = arith.subf %85, %84 : vector<16x128xf32>
    %87 = math.exp %86 : vector<16x128xf32>
    %cst_30 = arith.constant 1.000000e+00 : f32
    %88 = vector.broadcast %cst_30 : f32 to vector<16x128xf32>
    %89 = arith.addf %88, %87 : vector<16x128xf32>
    %cst_31 = arith.constant 1.000000e+00 : f32
    %90 = vector.broadcast %cst_31 : f32 to vector<16x128xf32>
    %91 = arith.divf %90, %89 : vector<16x128xf32>
    %c0_32 = arith.constant 0 : index
    %c0_33 = arith.constant 0 : index
    %92 = vector.load %arg4[%c0_32, %c0_33] : memref<16x128xf32, #tpu.memory_space<vmem>>, vector<16x128xf32>
    tpu.vector_store %arg4[%c0_32, %c0_33], %91 {strides = array<i32>} : memref<16x128xf32, #tpu.memory_space<vmem>>, vector<16x128xf32>,
    return
  }
  func.func @transform_0(%arg0: i32) -> (i32, i32) {
    %c0_i32 = arith.constant 0 : i32
    %c0_i32_0 = arith.constant 0 : i32
    %c0_i32_1 = arith.constant 0 : i32
    return %c0_i32, %c0_i32_0 : i32, i32
  }
  func.func @transform_1(%arg0: i32) -> i32 {
    %c0_i32 = arith.constant 0 : i32
    %c0_i32_0 = arith.constant 0 : i32
    return %c0_i32 : i32
  }
  func.func @transform_2(%arg0: i32) -> (i32, i32) {
    %c0_i32 = arith.constant 0 : i32
    %c0_i32_0 = arith.constant 0 : i32
    return %c0_i32, %arg0 : i32, i32
  }
  func.func @transform_3(%arg0: i32) -> (i32, i32) {
    %c0_i32 = arith.constant 0 : i32
    %c0_i32_0 = arith.constant 0 : i32
    return %c0_i32, %arg0 : i32, i32
  }
}

</mosaic_0001>

<bundles_post_ra>
// kernel: model_forward.1
= control target key start
LH: loop header
LB: loop body
LE: loop exit
PB: predicated region body
PF: predicated region fallthrough
CT: control target
= control target key end

     0   :  { %9 = vsyncpa [#allocation4], 0  ;;  %s251_s0 = inlined_call_operand.vmem [shape: f32[3,3], index: 0, kind: input, shape index: {}]   ;;  %s252_s1 = inlined_call_operand.<no memory space> [shape: f32[1], index: 1, kind: input, shape index: {}]   ;;  %s253_s2 = inlined_call_operand.vmem [shape: f32[16,128], index: 2, kind: input, shape index: {}]   ;;  %s254_s3 = inlined_call_operand.vmem [shape: f32[16,128], index: 3, kind: output, shape index: {}]  }
   0x1   :  { %s16_s14 = sshll.u32 %s251_s0, 4  ;;  %s17_s14 = int_to_ptr.vmem [resolvable:$true] %s16_s14 }
   0x2   :  { %s185_s15 = scalar_lea.vmem %s17_s14, 64  ;;  %p190_p1 = scmp.lt.s32.totalorder %s17_s14, %s17_s14 }
   0x3   :  { %p186_p0 = scmp.ne.s32.totalorder %s17_s14, %s185_s15  ;;  %p191_p2 = scmp.lt.s32.totalorder %s185_s15, %s185_s15 }
   0x5   :  { %p192_p3 = por %p191_p2, %p190_p1 }
   0x7   :  { %p193_p4 = pnand %p192_p3, %p186_p0 }
   0x9   :  { %196 = shalt.err (!%p193_p4)
}
   0xa   :  { %s199_s16 = smov [#allocation3]  }
   0xb   :  { %19 = dma.vmem_to_smem %s17_s14, 64, %s199_s16, [#allocation4]  }
   0xc   :  { %197 = dma.done.wait [#allocation4], 64  }
   0xd   :  { %198 = vsyncadd [#allocation4], 4294967232 }
   0xe   :  { %27 = sfence }
   0xf   :  { %v28_v0 = vld [vmem:[%s253_s2] sm:$0xff]  ;;  %v29_v1 = vld [vmem:[%s253_s2 + $0x8] sm:$0xff]  ;;  %v30_v2 = vlaneseq  ;;  %s75_s0 = sld [smem:[#allocation3]]  ;;  %s200_s28 = smov 1   ;;  %v144_v60 = vstv %s252_s1 }
  0x10   :  { %v53_v3 = vrot.slane %v28_v0, 7  ;;  %v54_v4 = vrot.slane %v29_v1, 7  ;;  %s166_s21 = sld [smem:[#allocation3 + $0x80]]  ;;  %v64_v6 = vrot.slane %v28_v0, 1  ;;  %v65_v7 = vrot.slane %v29_v1, 1  ;;  %s201_s29 = smov 127  }
  0x11   :  { %v47_v5 = vshrl.u32 %v30_v2, 7  ;;  %s167_s22 = sld [smem:[#allocation3 + $0x100]]  ;;  %v31_v54 = vand.u32 127, %v30_v2 }
  0x12   :  { %s232_s23 = sld [smem:[#allocation3 + $0x2]] }
  0x13   :  { %v48_v8 = vadd.s32 8, %v47_v5  ;;  %vm49_vm0 = vcmp.ge.s32.totalorder %v47_v5, 1  ;;  %vm55_vm1 = vcmp.lt.s32.totalorder %v47_v5, 1  ;;  %vm66_vm2 = vcmp.lt.s32.totalorder %v47_v5, 7  ;;  %s172_s24 = sld [smem:[#allocation3 + $0x82]] }
  0x14   :  { %v57_v9 = vsel %vm55_vm1, %v54_v4, %v53_v3  ;;  %v68_v10 = vsel %vm66_vm2, %v65_v7, %v64_v6  ;;  %v56_v11 = vsel %vm55_vm1, %v53_v3, %v54_v4  ;;  %s173_s2 = sld [smem:[#allocation3 + $0x102]]  ;;  %v67_v13 = vsel %vm66_vm2, %v64_v6, %v65_v7 }
  0x15   :  { %vm52_vm3 = vcmp.le.s32.totalorder %v48_v8, 14  ;;  %v62_v12 = vsel %vm49_vm0, %v57_v9, 0.0  ;;  %v76_v14 = vstv %s75_s0  ;;  %s234_s25 = sld [smem:[#allocation3 + $0x1]]  ;;  %v36_v55 = vand.u32 15, %v31_v54 }
  0x16   :  { %v74_v15 = vsel %vm52_vm3, %v68_v10, 0.0  ;;  %v77_v16 = vmul.f32 %v76_v14, %v62_v12  ;;  %v80_v17 = vstv %s166_s21  ;;  %v78_v18 = vmul.f32 %v76_v14, %v56_v11  ;;  %s236_s26 = sld [smem:[#allocation3 + $0x81]] }
  0x17   :  { %v81_v19 = vmul.f32 %v80_v17, %v28_v0  ;;  %v82_v20 = vmul.f32 %v80_v17, %v29_v1  ;;  %v86_v21 = vstv %s167_s22  ;;  %s170_s27 = sld [smem:[#allocation3 + $0x101]]  ;;  %vm44_vm4 = vcmp.ge.s32.totalorder %v36_v55, 1 }
  0x18   :  { %v87_v22 = vmul.f32 %v86_v21, %v67_v13  ;;  %v88_v23 = vmul.f32 %v86_v21, %v74_v15  ;;  %v108_v24 = vstv %s232_s23  ;;  %vm45_vm5 = vcmp.le.s32.totalorder %v36_v55, 14 }
  0x19   :  { %v83_v25 = vadd.f32 %v81_v19, %v77_v16  ;;  %v109_v26 = vmul.f32 %v108_v24, %v62_v12  ;;  %v112_v27 = vstv %s172_s24  ;;  %v110_v28 = vmul.f32 %v108_v24, %v56_v11 }
  0x1a   :  { %v113_v29 = vmul.f32 %v112_v27, %v28_v0  ;;  %v114_v30 = vmul.f32 %v112_v27, %v29_v1  ;;  %v118_v31 = vstv %s173_s2  ;;  %v84_v32 = vadd.f32 %v82_v20, %v78_v18 }
  0x1b   :  { %v89_v33 = vadd.f32 %v87_v22, %v83_v25  ;;  %v119_v34 = vmul.f32 %v118_v31, %v67_v13  ;;  %v92_v35 = vstv %s234_s25  ;;  %v120_v37 = vmul.f32 %v118_v31, %v74_v15 }
  0x1c   :  { %v115_v36 = vadd.f32 %v113_v29, %v109_v26  ;;  %v116_v38 = vadd.f32 %v114_v30, %v110_v28  ;;  %v93_v39 = vmul.f32 %v92_v35, %v62_v12  ;;  %v90_v40 = vadd.f32 %v88_v23, %v84_v32 }
  0x1d   :  { %123 = vrot.lane.b32.xlu0 %v89_v33, %s200_s28  ;;  %v96_v41 = vstv %s236_s26  ;;  %v102_v42 = vstv %s170_s27  ;;  %v94_v43 = vmul.f32 %v92_v35, %v56_v11 }
  0x1e   :  { %v121_v44 = vadd.f32 %v119_v34, %v115_v36  ;;  %v97_v45 = vmul.f32 %v96_v41, %v28_v0  ;;  %v103_v46 = vmul.f32 %v102_v42, %v67_v13  ;;  %v98_v47 = vmul.f32 %v96_v41, %v29_v1 }
  0x1f   :  { %v104_v48 = vmul.f32 %v102_v42, %v74_v15  ;;  %v122_v49 = vadd.f32 %v120_v37, %v116_v38 }
  0x20   :  { %131 = vrot.lane.b32.xlu1 %v121_v44, %s201_s29  ;;  %v99_v50 = vadd.f32 %v97_v45, %v93_v39  ;;  %v100_v51 = vadd.f32 %v98_v47, %v94_v43 }
  0x21   :  { %125 = vrot.lane.b32.xlu0 %v90_v40, %s200_s28 }
  0x22   :  { %v105_v52 = vadd.f32 %v103_v46, %v99_v50  ;;  %v106_v53 = vadd.f32 %v104_v48, %v100_v51 }
  0x24   :  { %133 = vrot.lane.b32.xlu1 %v122_v49, %s201_s29 }
  0x8f   :  { %v124_v56 = vpop.permute.xlu0 %123 }
  0x90   :  { %v129_v57 = vsel %vm44_vm4, %v124_v56, 0.0 }
  0x91   :  { %v139_v58 = vadd.f32 %v129_v57, %v105_v52 }
  0x92   :  { %v132_v59 = vpop.permute.xlu1 %131 }
  0x93   :  { %v137_v61 = vsel %vm45_vm5, %v132_v59, 0.0  ;;  %v126_v62 = vpop.permute.xlu0 %125 }
  0x94   :  { %v141_v63 = vadd.f32 %v139_v58, %v137_v61  ;;  %v130_v0 = vsel %vm44_vm4, %v126_v62, 0.0 }
  0x95   :  { %v140_v1 = vadd.f32 %v130_v0, %v106_v53 }
  0x96   :  { %v145_v3 = vadd.f32 %v144_v60, %v141_v63  ;;  %v134_v4 = vpop.permute.xlu1 %133 }
  0x97   :  { %v138_v5 = vsel %vm45_vm5, %v134_v4, 0.0 }
  0x98   :  { %v147_v2 = vsub.f32 0.0, %v145_v3  ;;  %v142_v6 = vadd.f32 %v140_v1, %v138_v5 }
  0x9a   :  { %v149_v7 = vmul.f32 1.442695, %v147_v2  ;;  %v146_v8 = vadd.f32 %v144_v60, %v142_v6 }
  0x9c   :  { %177 = vpow2.f32 %v149_v7  ;;  %v148_v9 = vsub.f32 0.0, %v146_v8 }
  0x9e   :  { %v151_v10 = vmul.f32 1.442695, %v148_v9 }
  0xa0   :  { %179 = vpow2.f32 %v151_v10 }
  0xa9   :  { %v178_v11 = vpop.eup %177 }
  0xaa   :  { %v153_v12 = vadd.f32 1.0, %v178_v11 }
  0xac   :  { %181 = vrcp.f32 %v153_v12 }
  0xad   :  { %v180_v13 = vpop.eup %179 }
  0xae   :  { %v154_v14 = vadd.f32 1.0, %v180_v13 }
  0xb0   :  { %183 = vrcp.f32 %v154_v14 }
  0xb9   :  { %v182_v15 = vpop.eup %181 }
  0xba   :  { %159 = vst [vmem:[%s254_s3] sm:$0xff] %v182_v15 }
  0xbd   :  { %v184_v16 = vpop.eup %183 }
  0xbe   :  { %160 = vst [vmem:[%s254_s3 + $0x8] sm:$0xff] %v184_v16 }
  0xbf   :  { %165 = vsyncpa [#allocation4], 1 }

</bundles_post_ra>
